<compile_context>
chip_gen: v7x
topology: tpu7x:2x2x1
jax: 0.10.0
libtpu: 0.0.40
codegen_flags: <defaults>
</compile_context>

<pallas_src>
import jax
import jax.numpy as jnp
from jax.experimental import pallas as pl
from jax.experimental.pallas import tpu as pltpu


def _site_tokenizer_kernel(x_ref, w_ref, b_ref, o_ref):
    # x_ref: (B, C, H, W) f32   w_ref: (C*H, hidden) bf16
    # b_ref: (1, hidden) f32    o_ref: (B, W, hidden) f32
    batch, c, h, w_len = x_ref.shape
    d = c * h
    wgt = w_ref[...]                       # resident bf16 weight (RHS)
    bias = b_ref[...]                      # (1, hidden) f32

    # B is tiny and static -> full unroll inside a single grid step.
    for b in range(batch):
        # Fused permute/reshape: (C, H, W) -> (C*H, W).  The transpose is
        # expressed as a leading-axis contraction (TN matmul) so it rides the
        # MXU operand path instead of a separate wrapper transpose pass.
        xb = x_ref[b].reshape(d, w_len).astype(jnp.bfloat16)
        acc = jax.lax.dot_general(
            xb, wgt,
            dimension_numbers=(((0,), (0,)), ((), ())),
            preferred_element_type=jnp.float32)         # (W, hidden) f32
        o_ref[b] = acc + bias                           # bias add in f32


def site_tokenizer_forward(x, weight, bias):
    """x: (B, C, H, W) f32.  weight: (hidden, C*H), bias: (hidden,) (torch layouts)."""
    B, C, H, W = x.shape
    hidden, D = weight.shape
    assert D == C * H, "proj.in_features must equal C*H"

    # Weight as (D, hidden) bf16: single resident matmul RHS, half the bytes.
    w_k = weight.T.astype(jnp.bfloat16)
    b_k = bias.astype(jnp.float32).reshape(1, hidden)

    flops = 2 * B * W * D * hidden
    bytes_accessed = (4 * B * C * H * W      # raw x, read once (f32)
                      + 2 * D * hidden       # bf16 weight
                      + 4 * hidden           # f32 bias
                      + 4 * B * W * hidden)  # f32 output

    return pl.pallas_call(
        _site_tokenizer_kernel,
        out_shape=jax.ShapeDtypeStruct((B, W, hidden), jnp.float32),
        grid=(1,),
        in_specs=[
            # Whole arrays in VMEM; everything here is tiny (<< 1 MiB).
            pl.BlockSpec((B, C, H, W), lambda i: (0, 0, 0, 0)),
            pl.BlockSpec((D, hidden), lambda i: (0, 0)),
            pl.BlockSpec((1, hidden), lambda i: (0, 0)),
        ],
        out_specs=pl.BlockSpec((B, W, hidden), lambda i: (0, 0, 0)),
        compiler_params=pltpu.CompilerParams(
            # One step: do not split ~1 us of work across TensorCores (v7x).
            dimension_semantics=("arbitrary",)),
        cost_estimate=pl.CostEstimate(
            flops=flops, transcendentals=0, bytes_accessed=bytes_accessed),
    )(x, w_k, b_k)


def site_tokenizer_reference(x, weight, bias):
    """Pure-JAX mirror of the PyTorch forward, at HIGHEST matmul precision."""
    B, C, H, W = x.shape
    x_t = jnp.transpose(x, (0, 3, 1, 2)).reshape(B, W, C * H)
    y = jnp.einsum("bwd,hd->bwh", x_t, weight,
                   precision=jax.lax.Precision.HIGHEST)
    return y + bias


if __name__ == "__main__":
    # Module defaults: input_channels=1, input_width=36, input_height=200,
    # hidden_size=128.  Small batch of 2.
    B, C, H, W = 2, 1, 200, 36
    HIDDEN = 128
    D = C * H

    key = jax.random.PRNGKey(0)
    kx, kw, kb = jax.random.split(key, 3)
    x = jax.random.normal(kx, (B, C, H, W), jnp.float32)
    weight = 0.05 * jax.random.normal(kw, (HIDDEN, D), jnp.float32)   # proj.weight
    bias = 0.10 * jax.random.normal(kb, (HIDDEN,), jnp.float32)       # proj.bias

    out = jax.block_until_ready(site_tokenizer_forward(x, weight, bias))
    ref = jax.block_until_ready(site_tokenizer_reference(x, weight, bias))

    assert out.shape == (B, W, HIDDEN)
    # Kernel computes the 200-deep dot with explicit bf16 operands (f32 accum);
    # reference is f32 at HIGHEST precision, so allow bf16-level error.
    assert jnp.allclose(out, ref, rtol=3e-2, atol=3e-2), (
        float(jnp.max(jnp.abs(out - ref))))

    print("KERNEL_OK")
</pallas_src>

<mosaic_0001>
module attributes {stable_mosaic.version = 11 : i64} {
  func.func @_site_tokenizer_kernel(%arg0: i32, %arg1: memref<2x1x200x36xf32, #tpu.memory_space<vmem>>, %arg2: memref<200x128xbf16, #tpu.memory_space<vmem>>, %arg3: memref<1x128xf32, #tpu.memory_space<vmem>>, %arg4: memref<2x36x128xf32, #tpu.memory_space<vmem>>) attributes {dimension_semantics = [#tpu.dimension_semantics<arbitrary>], iteration_bounds = array<i64: 1>, scalar_prefetch = 0 : i64, scratch_operands = 0 : i64, tpu.core_type = #tpu.core_type<tc>, window_params = [{pipeline_mode = #tpu.pipeline_mode<synchronous>, transform_indices = @transform_0, window_bounds = array<i64: 2, 1, 200, 36>}, {pipeline_mode = #tpu.pipeline_mode<synchronous>, transform_indices = @transform_1, window_bounds = array<i64: 200, 128>}, {pipeline_mode = #tpu.pipeline_mode<synchronous>, transform_indices = @transform_2, window_bounds = array<i64: 1, 128>}, {pipeline_mode = #tpu.pipeline_mode<synchronous>, transform_indices = @transform_3, window_bounds = array<i64: 2, 36, 128>}]} {
    %c0 = arith.constant 0 : index
    %c0_0 = arith.constant 0 : index
    %0 = vector.load %arg2[%c0, %c0_0] : memref<200x128xbf16, #tpu.memory_space<vmem>>, vector<200x128xbf16>
    %c0_1 = arith.constant 0 : index
    %c0_2 = arith.constant 0 : index
    %1 = vector.load %arg3[%c0_1, %c0_2] : memref<1x128xf32, #tpu.memory_space<vmem>>, vector<1x128xf32>
    %c0_3 = arith.constant 0 : index
    %c0_4 = arith.constant 0 : index
    %c0_5 = arith.constant 0 : index
    %c0_6 = arith.constant 0 : index
    %2 = vector.load %arg1[%c0_3, %c0_4, %c0_5, %c0_6] : memref<2x1x200x36xf32, #tpu.memory_space<vmem>>, vector<1x1x200x36xf32>
    %3 = vector.shape_cast %2 : vector<1x1x200x36xf32> to vector<1x200x36xf32>
    %4 = vector.shape_cast %3 : vector<1x200x36xf32> to vector<200x36xf32>
    %5 = arith.truncf %4 : vector<200x36xf32> to vector<200x36xbf16>
    %cst = arith.constant dense<0.000000e+00> : vector<36x128xf32>
    %6 = tpu.matmul %5, %0, %cst {dimension_numbers = #tpu.dot_dimension_numbers<[0], [0], [1], [1], [0, 1, 1, 1], [], []>} : vector<200x36xbf16>, vector<200x128xbf16>, vector<36x128xf32> -> vector<36x128xf32>
    %7 = vector.broadcast %1 : vector<1x128xf32> to vector<36x128xf32>
    %8 = arith.addf %6, %7 : vector<36x128xf32>
    %c0_7 = arith.constant 0 : index
    %c0_8 = arith.constant 0 : index
    %c0_9 = arith.constant 0 : index
    %9 = vector.load %arg4[%c0_7, %c0_8, %c0_9] : memref<2x36x128xf32, #tpu.memory_space<vmem>>, vector<1x36x128xf32>
    %10 = vector.shape_cast %9 : vector<1x36x128xf32> to vector<36x128xf32>
    %11 = vector.shape_cast %8 : vector<36x128xf32> to vector<1x36x128xf32>
    tpu.vector_store %arg4[%c0_7, %c0_8, %c0_9], %11 {strides = array<i32>} : memref<2x36x128xf32, #tpu.memory_space<vmem>>, vector<1x36x128xf32>,
    %c1 = arith.constant 1 : index
    %c0_10 = arith.constant 0 : index
    %c0_11 = arith.constant 0 : index
    %c0_12 = arith.constant 0 : index
    %12 = vector.load %arg1[%c1, %c0_10, %c0_11, %c0_12] : memref<2x1x200x36xf32, #tpu.memory_space<vmem>>, vector<1x1x200x36xf32>
    %13 = vector.shape_cast %12 : vector<1x1x200x36xf32> to vector<1x200x36xf32>
    %14 = vector.shape_cast %13 : vector<1x200x36xf32> to vector<200x36xf32>
    %15 = arith.truncf %14 : vector<200x36xf32> to vector<200x36xbf16>
    %cst_13 = arith.constant dense<0.000000e+00> : vector<36x128xf32>
    %16 = tpu.matmul %15, %0, %cst_13 {dimension_numbers = #tpu.dot_dimension_numbers<[0], [0], [1], [1], [0, 1, 1, 1], [], []>} : vector<200x36xbf16>, vector<200x128xbf16>, vector<36x128xf32> -> vector<36x128xf32>
    %17 = vector.broadcast %1 : vector<1x128xf32> to vector<36x128xf32>
    %18 = arith.addf %16, %17 : vector<36x128xf32>
    %c1_14 = arith.constant 1 : index
    %c0_15 = arith.constant 0 : index
    %c0_16 = arith.constant 0 : index
    %19 = vector.load %arg4[%c1_14, %c0_15, %c0_16] : memref<2x36x128xf32, #tpu.memory_space<vmem>>, vector<1x36x128xf32>
    %20 = vector.shape_cast %19 : vector<1x36x128xf32> to vector<36x128xf32>
    %21 = vector.shape_cast %18 : vector<36x128xf32> to vector<1x36x128xf32>
    tpu.vector_store %arg4[%c1_14, %c0_15, %c0_16], %21 {strides = array<i32>} : memref<2x36x128xf32, #tpu.memory_space<vmem>>, vector<1x36x128xf32>,
    return
  }
  func.func @transform_0(%arg0: i32) -> (i32, i32, i32, i32) {
    %c0_i32 = arith.constant 0 : i32
    %c0_i32_0 = arith.constant 0 : i32
    %c0_i32_1 = arith.constant 0 : i32
    %c0_i32_2 = arith.constant 0 : i32
    %c0_i32_3 = arith.constant 0 : i32
    return %c0_i32, %c0_i32_0, %c0_i32_1, %c0_i32_2 : i32, i32, i32, i32
  }
  func.func @transform_1(%arg0: i32) -> (i32, i32) {
    %c0_i32 = arith.constant 0 : i32
    %c0_i32_0 = arith.constant 0 : i32
    %c0_i32_1 = arith.constant 0 : i32
    return %c0_i32, %c0_i32_0 : i32, i32
  }
  func.func @transform_2(%arg0: i32) -> (i32, i32) {
    %c0_i32 = arith.constant 0 : i32
    %c0_i32_0 = arith.constant 0 : i32
    %c0_i32_1 = arith.constant 0 : i32
    return %c0_i32, %c0_i32_0 : i32, i32
  }
  func.func @transform_3(%arg0: i32) -> (i32, i32, i32) {
    %c0_i32 = arith.constant 0 : i32
    %c0_i32_0 = arith.constant 0 : i32
    %c0_i32_1 = arith.constant 0 : i32
    %c0_i32_2 = arith.constant 0 : i32
    return %c0_i32, %c0_i32_0, %c0_i32_1 : i32, i32, i32
  }
}

</mosaic_0001>

<bundles_post_ra>
// kernel: tpu_custom_call.1
= control target key start
LH: loop header
LB: loop body
LE: loop exit
PB: predicated region body
PF: predicated region fallthrough
CT: control target
= control target key end

     0   :  { %v477_v3 = vmov 0   ;;  %vm202_vm0 = vcmask 1043456   ;;  %vm192_vm1 = vcmask 588800   ;;  %s752_s0 = inlined_call_operand.vmem [shape: f32[2,1,200,36], index: 0, kind: input, shape index: {}]   ;;  %s753_s1 = inlined_call_operand.vmem [shape: bf16[200,128], index: 1, kind: input, shape index: {}]   ;;  %s754_s2 = inlined_call_operand.vmem [shape: f32[1,128], index: 2, kind: input, shape index: {}]   ;;  %s755_s3 = inlined_call_operand.vmem [shape: f32[2,36,128], index: 3, kind: output, shape index: {}]  }
   0x1   :  { %v446_v0 = vld [vmem:[%s752_s0 + $0x148] sm:$0xff]  ;;  %v447_v1 = vld [vmem:[%s752_s0 + $0x150] sm:$0xff]  ;;  %v57_v2 = vld [vmem:[%s752_s0 + $0x80] sm:$0xff]  ;;  %206 = vmatprep.subr.bf16.mxu0 %v477_v3  ;;  %347 = vmatprep.subr.bf16.mxu1 %v477_v3 }
   0x2   :  { %v301_v4 = vpack.c.bf16 %v447_v1, %v446_v0  ;;  %v58_v5 = vld [vmem:[%s752_s0 + $0x88] sm:$0xff]  ;;  %v448_v6 = vld [vmem:[%s752_s0 + $0x158] sm:$0xff]  ;;  %v449_v7 = vld [vmem:[%s752_s0 + $0x160] sm:$0xff] }
   0x3   :  { %v74_v8 = vpack.c.bf16 %v58_v5, %v57_v2  ;;  %v59_v9 = vld [vmem:[%s752_s0 + $0x90] sm:$0xff]  ;;  %v60_v10 = vld [vmem:[%s752_s0 + $0x98] sm:$0xff]  ;;  %v302_v11 = vpack.c.bf16 %v449_v7, %v448_v6  ;;  %v450_v13 = vld [vmem:[%s752_s0 + $0x168] sm:$0xff] }
   0x4   :  { %322 = vxpose.xlu1.c.b16.start [1/5] (short) (narrow) %v301_v4, 48  ;;  %v75_v12 = vpack.c.bf16 %v60_v10, %v59_v9  ;;  %v451_v14 = vld [vmem:[%s752_s0 + $0x170] sm:$0xff]  ;;  %v61_v15 = vld [vmem:[%s752_s0 + $0xa0] sm:$0xff]  ;;  %v62_v16 = vld [vmem:[%s752_s0 + $0xa8] sm:$0xff] }
   0x5   :  { %101 = vxpose.xlu0.c.b16.start [1/5] (short) (narrow) %v74_v8, 48  ;;  %v303_v17 = vpack.c.bf16 %v451_v14, %v450_v13  ;;  %v76_v18 = vpack.c.bf16 %v62_v16, %v61_v15  ;;  %v452_v19 = vld [vmem:[%s752_s0 + $0x178] sm:$0xff]  ;;  %v453_v20 = vld [vmem:[%s752_s0 + $0x180] sm:$0xff]  ;;  %v63_v21 = vld [vmem:[%s752_s0 + $0xb0] sm:$0xff] }
   0x6   :  { %v64_v22 = vld [vmem:[%s752_s0 + $0xb8] sm:$0xff]  ;;  %v304_v23 = vpack.c.bf16 %v453_v20, %v452_v19  ;;  %v454_v25 = vld [vmem:[%s752_s0 + $0x188] sm:$0xff]  ;;  %v65_v26 = vld [vmem:[%s752_s0 + $0xc0] sm:$0xff] }
   0x7   :  { %v77_v24 = vpack.c.bf16 %v64_v22, %v63_v21  ;;  %v305_v27 = vpack.c.bf16 %v454_v25, %v454_v25  ;;  %v430_v28 = vld [vmem:[%s752_s0 + $0xc8] sm:$0xff]  ;;  %v431_v29 = vld [vmem:[%s752_s0 + $0xd0] sm:$0xff]  ;;  %v78_v30 = vpack.c.bf16 %v65_v26, %v65_v26  ;;  %v41_v31 = vld [vmem:[%s752_s0] sm:$0xff] }
   0x8   :  { %323 = vxpose.xlu1.c.b16.cont [2/5] (short) (narrow) %v302_v11, 48  ;;  %v42_v32 = vld [vmem:[%s752_s0 + $0x8] sm:$0xff]  ;;  %v464_v33 = vld [vmem:[%s753_s1] sm:$0xff]   ;;  %v432_v34 = vld [vmem:[%s752_s0 + $0xd8] sm:$0xff]  ;;  %v293_v36 = vpack.c.bf16 %v431_v29, %v430_v28 }
   0x9   :  { %102 = vxpose.xlu0.c.b16.cont [2/5] (short) (narrow) %v75_v12, 48  ;;  %v433_v35 = vld [vmem:[%s752_s0 + $0xe0] sm:$0xff]  ;;  %207 = vmatpush1.bf16.msra.mxu0 %v464_v33  ;;  %v465_v37 = vld [vmem:[%s753_s1 + $0x8] sm:$0xff]   ;;  %v66_v38 = vpack.c.bf16 %v42_v32, %v41_v31  ;;  %v43_v39 = vld [vmem:[%s752_s0 + $0x10] sm:$0xff] }
   0xa   :  { %348 = vmatpush1.bf16.msra.mxu1 %v464_v33  ;;  %v44_v40 = vld [vmem:[%s752_s0 + $0x18] sm:$0xff]  ;;  %208 = vmatprep.subr.bf16.mxu0 %v477_v3  ;;  %v434_v41 = vld [vmem:[%s752_s0 + $0xe8] sm:$0xff]  ;;  %v435_v42 = vld [vmem:[%s752_s0 + $0xf0] sm:$0xff]  ;;  %v294_v43 = vpack.c.bf16 %v433_v35, %v432_v34 }
   0xb   :  { %349 = vmatprep.subr.bf16.mxu1 %v477_v3  ;;  %v466_v44 = vld [vmem:[%s753_s1 + $0x10] sm:$0xff]   ;;  %v67_v45 = vpack.c.bf16 %v44_v40, %v43_v39  ;;  %v45_v46 = vld [vmem:[%s752_s0 + $0x20] sm:$0xff]  ;;  %v46_v47 = vld [vmem:[%s752_s0 + $0x28] sm:$0xff]  ;;  %v295_v49 = vpack.c.bf16 %v435_v42, %v434_v41 }
   0xc   :  { %324 = vxpose.xlu1.c.b16.cont [3/5] (short) (narrow) %v303_v17, 48  ;;  %v436_v48 = vld [vmem:[%s752_s0 + $0xf8] sm:$0xff]  ;;  %v68_v51 = vpack.c.bf16 %v46_v47, %v45_v46  ;;  %v437_v52 = vld [vmem:[%s752_s0 + $0x100] sm:$0xff]  ;;  %v47_v53 = vld [vmem:[%s752_s0 + $0x30] sm:$0xff] }
   0xd   :  { %103 = vxpose.xlu0.c.b16.cont [3/5] (short) (narrow) %v76_v18, 48  ;;  %209 = vmatpush1.bf16.msra.mxu0 %v465_v37  ;;  %v467_v50 = vld [vmem:[%s753_s1 + $0x18] sm:$0xff]   ;;  %v296_v55 = vpack.c.bf16 %v437_v52, %v436_v48  ;;  %v468_v56 = vld [vmem:[%s753_s1 + $0x20] sm:$0xff]   ;;  %v438_v58 = vld [vmem:[%s752_s0 + $0x108] sm:$0xff] }
   0xe   :  { %350 = vmatpush1.bf16.msra.mxu1 %v465_v37  ;;  %210 = vmatprep.subr.bf16.mxu0 %v477_v3  ;;  %v48_v54 = vld [vmem:[%s752_s0 + $0x38] sm:$0xff]  ;;  %v439_v59 = vld [vmem:[%s752_s0 + $0x110] sm:$0xff]  ;;  %v49_v60 = vld [vmem:[%s752_s0 + $0x40] sm:$0xff] }
   0xf   :  { %351 = vmatprep.subr.bf16.mxu1 %v477_v3  ;;  %v69_v57 = vpack.c.bf16 %v48_v54, %v47_v53  ;;  %v50_v61 = vld [vmem:[%s752_s0 + $0x48] sm:$0xff]  ;;  %v297_v62 = vpack.c.bf16 %v439_v59, %v438_v58  ;;  %v440_v1 = vld [vmem:[%s752_s0 + $0x118] sm:$0xff]  ;;  %v441_v2 = vld [vmem:[%s752_s0 + $0x120] sm:$0xff] }
  0x10   :  { %325 = vxpose.xlu1.c.b16.cont [4/5] (short) (narrow) %v304_v23, 48  ;;  %v469_v63 = vld [vmem:[%s753_s1 + $0x28] sm:$0xff]   ;;  %v70_v0 = vpack.c.bf16 %v50_v61, %v49_v60  ;;  %v51_v4 = vld [vmem:[%s752_s0 + $0x50] sm:$0xff]  ;;  %v52_v5 = vld [vmem:[%s752_s0 + $0x58] sm:$0xff]  ;;  %v298_v6 = vpack.c.bf16 %v441_v2, %v440_v1 }
  0x11   :  { %104 = vxpose.xlu0.c.b16.cont [4/5] (short) (narrow) %v77_v24, 48  ;;  %211 = vmatpush1.bf16.msra.mxu0 %v466_v44  ;;  %v470_v7 = vld [vmem:[%s753_s1 + $0x30] sm:$0xff]   ;;  %v71_v8 = vpack.c.bf16 %v52_v5, %v51_v4  ;;  %v442_v9 = vld [vmem:[%s752_s0 + $0x128] sm:$0xff]  ;;  %v53_v11 = vld [vmem:[%s752_s0 + $0x60] sm:$0xff] }
  0x12   :  { %352 = vmatpush1.bf16.msra.mxu1 %v466_v44  ;;  %212 = vmatprep.subr.bf16.mxu0 %v477_v3  ;;  %v443_v10 = vld [vmem:[%s752_s0 + $0x130] sm:$0xff]  ;;  %v54_v12 = vld [vmem:[%s752_s0 + $0x68] sm:$0xff]  ;;  %v471_v14 = vld [vmem:[%s753_s1 + $0x38] sm:$0xff]  }
  0x13   :  { %353 = vmatprep.subr.bf16.mxu1 %v477_v3  ;;  %v299_v13 = vpack.c.bf16 %v443_v10, %v442_v9  ;;  %v72_v15 = vpack.c.bf16 %v54_v12, %v53_v11  ;;  %v444_v16 = vld [vmem:[%s752_s0 + $0x138] sm:$0xff]  ;;  %v445_v17 = vld [vmem:[%s752_s0 + $0x140] sm:$0xff]  ;;  %v55_v18 = vld [vmem:[%s752_s0 + $0x70] sm:$0xff] }
  0x14   :  { %326 = vxpose.xlu1.c.b16.end [5/5] (short) (narrow) %v305_v27, 48  ;;  %v56_v19 = vld [vmem:[%s752_s0 + $0x78] sm:$0xff]  ;;  %v300_v20 = vpack.c.bf16 %v445_v17, %v444_v16  ;;  %v472_v21 = vld [vmem:[%s753_s1 + $0x40] sm:$0xff]   ;;  %v473_v23 = vld [vmem:[%s753_s1 + $0x48] sm:$0xff]  }
  0x15   :  { %105 = vxpose.xlu0.c.b16.end [5/5] (short) (narrow) %v78_v30, 48  ;;  %213 = vmatpush1.bf16.msra.mxu0 %v467_v50  ;;  %v73_v22 = vpack.c.bf16 %v56_v19, %v55_v18  ;;  %v474_v24 = vld [vmem:[%s753_s1 + $0x50] sm:$0xff]   ;;  %v475_v25 = vld [vmem:[%s753_s1 + $0x58] sm:$0xff]   ;;  %v476_v26 = vld [vmem:[%s753_s1 + $0x60] ss:$0 sps:$4 sm:$0xff]  }
  0x16   :  { %354 = vmatpush1.bf16.msra.mxu1 %v467_v50  ;;  %214 = vmatprep.subr.bf16.mxu0 %v477_v3  ;;  %v204_v27 = vsel %vm202_vm0, %v476_v26, 0  ;;  %v413_v39 = vld [vmem:[%s754_s2] ss:$0 sm:$0xff] }
  0x17   :  { %355 = vmatprep.subr.bf16.mxu1 %v477_v3 }
  0x18   :  { %306 = vxpose.xlu1.c.b16.start [1/8] (narrow) %v293_v36, 48 }
  0x19   :  { %85 = vxpose.xlu0.c.b16.start [1/8] (narrow) %v66_v38, 48  ;;  %215 = vmatpush1.bf16.msra.mxu0 %v468_v56 }
  0x1a   :  { %356 = vmatpush1.bf16.msra.mxu1 %v468_v56  ;;  %216 = vmatprep.subr.bf16.mxu0 %v477_v3 }
  0x1b   :  { %357 = vmatprep.subr.bf16.mxu1 %v477_v3 }
  0x1c   :  { %307 = vxpose.xlu1.c.b16.cont [2/8] (narrow) %v294_v43, 48 }
  0x1d   :  { %86 = vxpose.xlu0.c.b16.cont [2/8] (narrow) %v67_v45, 48  ;;  %217 = vmatpush1.bf16.msra.mxu0 %v469_v63 }
  0x1e   :  { %358 = vmatpush1.bf16.msra.mxu1 %v469_v63  ;;  %218 = vmatprep.subr.bf16.mxu0 %v477_v3 }
  0x1f   :  { %359 = vmatprep.subr.bf16.mxu1 %v477_v3 }
  0x20   :  { %308 = vxpose.xlu1.c.b16.cont [3/8] (narrow) %v295_v49, 48 }
  0x21   :  { %87 = vxpose.xlu0.c.b16.cont [3/8] (narrow) %v68_v51, 48  ;;  %219 = vmatpush1.bf16.msra.mxu0 %v470_v7 }
  0x22   :  { %360 = vmatpush1.bf16.msra.mxu1 %v470_v7  ;;  %220 = vmatprep.subr.bf16.mxu0 %v477_v3 }
  0x23   :  { %361 = vmatprep.subr.bf16.mxu1 %v477_v3 }
  0x24   :  { %309 = vxpose.xlu1.c.b16.cont [4/8] (narrow) %v296_v55, 48 }
  0x25   :  { %88 = vxpose.xlu0.c.b16.cont [4/8] (narrow) %v69_v57, 48  ;;  %221 = vmatpush1.bf16.msra.mxu0 %v471_v14 }
  0x26   :  { %362 = vmatpush1.bf16.msra.mxu1 %v471_v14  ;;  %222 = vmatprep.subr.bf16.mxu0 %v477_v3 }
  0x27   :  { %363 = vmatprep.subr.bf16.mxu1 %v477_v3 }
  0x28   :  { %310 = vxpose.xlu1.c.b16.cont [5/8] (narrow) %v297_v62, 48 }
  0x29   :  { %89 = vxpose.xlu0.c.b16.cont [5/8] (narrow) %v70_v0, 48  ;;  %223 = vmatpush1.bf16.msra.mxu0 %v472_v21 }
  0x2a   :  { %364 = vmatpush1.bf16.msra.mxu1 %v472_v21  ;;  %224 = vmatprep.subr.bf16.mxu0 %v477_v3 }
  0x2b   :  { %365 = vmatprep.subr.bf16.mxu1 %v477_v3 }
  0x2c   :  { %311 = vxpose.xlu1.c.b16.cont [6/8] (narrow) %v298_v6, 48 }
  0x2d   :  { %90 = vxpose.xlu0.c.b16.cont [6/8] (narrow) %v71_v8, 48  ;;  %225 = vmatpush1.bf16.msra.mxu0 %v473_v23 }
  0x2e   :  { %366 = vmatpush1.bf16.msra.mxu1 %v473_v23  ;;  %226 = vmatprep.subr.bf16.mxu0 %v477_v3 }
  0x2f   :  { %367 = vmatprep.subr.bf16.mxu1 %v477_v3 }
  0x30   :  { %312 = vxpose.xlu1.c.b16.cont [7/8] (narrow) %v299_v13, 48 }
  0x31   :  { %91 = vxpose.xlu0.c.b16.cont [7/8] (narrow) %v72_v15, 48  ;;  %227 = vmatpush1.bf16.msra.mxu0 %v474_v24 }
  0x32   :  { %368 = vmatpush1.bf16.msra.mxu1 %v474_v24  ;;  %228 = vmatprep.subr.bf16.mxu0 %v477_v3 }
  0x33   :  { %369 = vmatprep.subr.bf16.mxu1 %v477_v3 }
  0x34   :  { %313 = vxpose.xlu1.c.b16.end [8/8] (narrow) %v300_v20, 48 }
  0x35   :  { %92 = vxpose.xlu0.c.b16.end [8/8] (narrow) %v73_v22, 48  ;;  %229 = vmatpush1.bf16.msra.mxu0 %v475_v25 }
  0x36   :  { %370 = vmatpush1.bf16.msra.mxu1 %v475_v25  ;;  %230 = vmatprep.subr.bf16.mxu0 %v477_v3 }
  0x37   :  { %371 = vmatprep.subr.bf16.mxu1 %v477_v3 }
  0x39   :  { %231 = vmatpush1.bf16.msra.mxu0 %v204_v27 }
  0x3a   :  { %372 = vmatpush1.bf16.msra.mxu1 %v204_v27 }
  0x6a   :  { %v330_v28 = vpop.trf.xlu1 }
  0x6b   :  { %v109_v29 = vpop.trf.xlu0  ;;  %455 = vmatprep.mubr.msk.bf16.mxu1 %vm192_vm1, %v330_v28 }
  0x6c   :  { %427 = vmatprep.mubr.msk.bf16.mxu0 %vm192_vm1, %v109_v29 }
  0x6e   :  { %v331_v30 = vpop.trf.xlu1 }
  0x6f   :  { %v110_v31 = vpop.trf.xlu0 }
  0x72   :  { %v332_v32 = vpop.trf.xlu1 }
  0x73   :  { %v111_v33 = vpop.trf.xlu0 }
  0x7e   :  { %v314_v34 = vpop.trf.xlu1 }
  0x7f   :  { %v93_v35 = vpop.trf.xlu0  ;;  %380 = vmatmul.mubr.bf16.vlgmr.msra.gmra.mrb[0].mxu1 %v314_v34 }
  0x80   :  { %239 = vmatmul.mubr.bf16.vlgmr.msra.gmra.mrb[0].mxu0 %v93_v35  ;;  %456 = vmatprep.mubr.msk.bf16.mxu1 %vm192_vm1, %v331_v30 }
  0x81   :  { %428 = vmatprep.mubr.msk.bf16.mxu0 %vm192_vm1, %v110_v31 }
  0x82   :  { %v315_v3 = vpop.trf.xlu1 }
  0x83   :  { %v94_v36 = vpop.trf.xlu0 }
  0x86   :  { %v316_v37 = vpop.trf.xlu1 }
  0x87   :  { %388 = vmatmul.mubr.bf16.gmra.mrb[4].mxu1 %v315_v3  ;;  %v95_v38 = vpop.trf.xlu0 }
  0x88   :  { %247 = vmatmul.mubr.bf16.gmra.mrb[4].mxu0 %v94_v36  ;;  %457 = vmatprep.mubr.msk.bf16.mxu1 %vm192_vm1, %v332_v32 }
  0x89   :  { %429 = vmatprep.mubr.msk.bf16.mxu0 %vm192_vm1, %v111_v33 }
  0x8f   :  { %396 = vmatmul.mubr.bf16.gmra.mrb[8].mxu1 %v316_v37 }
  0x90   :  { %255 = vmatmul.mubr.bf16.gmra.mrb[8].mxu0 %v95_v38 }
 0x152   :  { %v381_v40 = vpop.f32.mrb[0].mxu1 }
 0x153   :  { %v240_v41 = vpop.f32.mrb[0].mxu0  ;;  %v382_v42 = vadd.f32 %v413_v39, %v381_v40  ;;  %v383_v43 = vpop.f32.mrb[1].mxu1 }
 0x154   :  { %v241_v44 = vadd.f32 %v413_v39, %v240_v41  ;;  %v242_v45 = vpop.f32.mrb[1].mxu0  ;;  %v384_v46 = vpop.f32.mrb[2].mxu1 }
 0x155   :  { %458 = vst [vmem:[%s755_s3 + $0x28] sm:$0xff] %v382_v42  ;;  %v243_v47 = vpop.f32.mrb[2].mxu0  ;;  %v385_v48 = vadd.f32 %v413_v39, %v384_v46  ;;  %v386_v49 = vpop.f32.mrb[3].mxu1 }
 0x156   :  { %262 = vst [vmem:[%s755_s3] sm:$0xff] %v241_v44  ;;  %v244_v50 = vadd.f32 %v413_v39, %v243_v47  ;;  %v245_v51 = vpop.f32.mrb[3].mxu0 }
 0x157   :  { %459 = vst [vmem:[%s755_s3 + $0x30] sm:$0xff] %v385_v48 }
 0x158   :  { %263 = vst [vmem:[%s755_s3 + $0x8] sm:$0xff] %v244_v50 }
 0x15a   :  { %v389_v52 = vpop.f32.mrb[4].mxu1 }
 0x15b   :  { %v248_v53 = vpop.f32.mrb[4].mxu0  ;;  %v390_v54 = vadd.f32 %v413_v39, %v389_v52  ;;  %v391_v55 = vpop.f32.mrb[5].mxu1 }
 0x15c   :  { %v249_v56 = vadd.f32 %v413_v39, %v248_v53  ;;  %v250_v57 = vpop.f32.mrb[5].mxu0  ;;  %v392_v58 = vpop.f32.mrb[6].mxu1 }
 0x15d   :  { %460 = vst [vmem:[%s755_s3 + $0x38] sm:$0xff] %v390_v54  ;;  %v251_v59 = vpop.f32.mrb[6].mxu0  ;;  %v393_v60 = vadd.f32 %v413_v39, %v392_v58  ;;  %v394_v61 = vpop.f32.mrb[7].mxu1 }
 0x15e   :  { %264 = vst [vmem:[%s755_s3 + $0x10] sm:$0xff] %v249_v56  ;;  %v252_v62 = vadd.f32 %v413_v39, %v251_v59  ;;  %v253_v63 = vpop.f32.mrb[7].mxu0 }
 0x15f   :  { %461 = vst [vmem:[%s755_s3 + $0x40] sm:$0xff] %v393_v60 }
 0x160   :  { %265 = vst [vmem:[%s755_s3 + $0x18] sm:$0xff] %v252_v62 }
 0x162   :  { %v397_v0 = vpop.f32.mrb[8].mxu1 }
 0x163   :  { %v256_v1 = vpop.f32.mrb[8].mxu0  ;;  %v398_v2 = vadd.f32 %v413_v39, %v397_v0  ;;  %v399_v4 = vpop.f32.mrb[9].mxu1 }
 0x164   :  { %v257_v5 = vadd.f32 %v413_v39, %v256_v1  ;;  %v258_v6 = vpop.f32.mrb[9].mxu0  ;;  %v400_v7 = vpop.f32.mrb[10].mxu1 }
 0x165   :  { %462 = vst [vmem:[%s755_s3 + $0x48] sm:$0xf] %v398_v2  ;;  %v259_v8 = vpop.f32.mrb[10].mxu0  ;;  %v401_v9 = vpop.f32.mrb[11].mxu1 }
 0x166   :  { %266 = vst [vmem:[%s755_s3 + $0x20] sm:$0xf] %v257_v5  ;;  %v260_v10 = vpop.f32.mrb[11].mxu0 }

</bundles_post_ra>
